<compile_context>
chip_gen: v7x
topology: tpu7x:2x2x1
jax: 0.10.0
libtpu: 0.0.40
codegen_flags: <defaults>
</compile_context>

<pallas_src>
import functools

import jax
import jax.numpy as jnp
from jax.experimental import pallas as pl
from jax.experimental.pallas import tpu as pltpu


def _ceil_div(a, b):
    return -(-a // b)


def _round_up(a, b):
    return _ceil_div(a, b) * b


def _spectral_kernel(x_ref, w_ref, ws_ref, a_ref, at_ref, atg_ref, b_ref, o_ref,
                     *, eps, inv_d):
    # x_ref  : (tm, Kin)  packed patches (G tokens per row), input dtype
    # w_ref  : (Kin, Dp)  block-diagonal conv weight, bf16
    # ws_ref : (Kin, G)   per-group weight sums / D (mean folded into input GEMM), bf16
    # a_ref  : (Dp, G)    0/1 group-sum matrix, bf16 (exact)
    # at_ref : (G, Dp)    0/1 group-broadcast matrix, bf16 (exact)
    # atg_ref: (G, Dp)    group-broadcast matrix with LN gamma folded in, bf16
    # b_ref  : (1, Dp)    LN beta tiled per group, f32
    # o_ref  : (tm, Dp)
    x = x_ref[...].astype(jnp.bfloat16)

    # Patch embedding (Conv1d k=P, stride=P, no bias): single-pass bf16 MXU, f32 accum.
    y = jnp.dot(x, w_ref[...], preferred_element_type=jnp.float32)          # (tm, Dp)
    # Per-token mean, computed from the same lane-dense input (K = Kin).
    mean = jnp.dot(x, ws_ref[...], preferred_element_type=jnp.float32)      # (tm, G)

    mean_b = jnp.dot(mean.astype(jnp.bfloat16), at_ref[...],
                     preferred_element_type=jnp.float32)                    # (tm, Dp)
    c = y - mean_b
    var = jnp.dot((c * c).astype(jnp.bfloat16), a_ref[...],
                  preferred_element_type=jnp.float32) * inv_d               # (tm, G)
    inv = jax.lax.rsqrt(var + eps)                                          # (tm, G)
    # Broadcast inv-std back to lanes; LN gamma already folded into atg.
    inv_gb = jnp.dot(inv.astype(jnp.bfloat16), atg_ref[...],
                     preferred_element_type=jnp.float32)                    # (tm, Dp)

    o_ref[...] = (c * inv_gb + b_ref[...]).astype(o_ref.dtype)


def spectral_encoding(x, conv_weight, gamma, beta, *, patch_size, eps=1e-5,
                      tm_target=512, out_dtype=jnp.bfloat16):
    """x: (B, 1, L); conv_weight: (D, 1, P); gamma/beta: (D,). Returns (B, N, D).

    Math matches Conv1d(1, D, k=P, stride=P, bias=False) -> transpose -> LayerNorm(D).
    Matmuls run in single-pass bf16 with f32 accumulation; pass out_dtype=jnp.float32
    if a full-precision output is required.
    """
    B, c_in, L = x.shape
    assert c_in == 1, "SpectralEncoding expects a single input channel"
    D, _, P = conv_weight.shape
    assert P == patch_size and L % P == 0
    N = L // P
    M = B * N

    # Lane-dense packing: pad the patch dim up to a power of two so G = 128 // P_eff
    # tokens share one 128-lane input row and G*D lane-dense output lanes.
    if P <= 128:
        P_eff = 1
        while P_eff < P:
            P_eff *= 2
        G = 128 // P_eff
    else:
        P_eff = _round_up(P, 128)
        G = 1   # TODO(synk): D < 128 with P > 128 still yields a lane-sparse output.
    Kin = G * P_eff
    Dp = G * D

    mp_raw = _ceil_div(M, G)          # packed compute rows
    pad_rows = mp_raw * G - M

    # Row tiling: clamp by a VMEM budget, aim for >=2 grid steps (v7x megacore),
    # and let Pallas mask ragged last row-blocks instead of padding whole arrays.
    ALIGN = 16                        # sublane alignment valid for f32 and bf16 tiles
    vmem_rows = max(ALIGN, ((6 << 20) // (Dp * 4)) // ALIGN * ALIGN)
    tm_cap = max(ALIGN, min(tm_target, vmem_rows))
    if mp_raw <= 2 * ALIGN:
        tm = mp_raw                   # single full-extent block (always layout-legal)
    elif mp_raw >= 2 * tm_cap:
        tm = tm_cap
    else:
        tm = min(tm_cap, _round_up(_ceil_div(mp_raw, 2), ALIGN))
    n_steps = _ceil_div(mp_raw, tm)

    # ---- wrapper-side glue (pure layout, no compute hoisted) ----
    x_flat = x.reshape(M, P)
    if pad_rows or P_eff > P:
        # TODO(synk): fuse this tail-row / patch padding into the kernel; the extra
        # HBM pass only triggers when M % G != 0 or P is not a power of two <= 128.
        x_flat = jnp.pad(x_flat, ((0, pad_rows), (0, P_eff - P)))
    x_packed = x_flat.reshape(mp_raw, Kin)

    w2d = jnp.transpose(conv_weight[:, 0, :], (1, 0)).astype(jnp.float32)   # (P, D)
    if P_eff > P:
        w2d = jnp.pad(w2d, ((0, P_eff - P), (0, 0)))
    eye_g = jnp.eye(G, dtype=jnp.float32)
    w_bd = jnp.kron(eye_g, w2d)                                             # (Kin, Dp)
    ws = jnp.kron(eye_g, w2d.sum(axis=1, keepdims=True) * (1.0 / D))        # (Kin, G)
    a_mat = jnp.repeat(eye_g, D, axis=0)                                    # (Dp, G)
    at_mat = a_mat.T                                                        # (G, Dp)
    g_tiled = jnp.tile(gamma.astype(jnp.float32), G)                        # (Dp,)
    at_g = at_mat * g_tiled[None, :]                                        # (G, Dp)
    b2d = jnp.tile(beta.astype(jnp.float32), G).reshape(1, Dp)              # (1, Dp)

    w_bf = w_bd.astype(jnp.bfloat16)
    ws_bf = ws.astype(jnp.bfloat16)
    a_bf = a_mat.astype(jnp.bfloat16)      # 0/1 -> exact in bf16
    at_bf = at_mat.astype(jnp.bfloat16)    # 0/1 -> exact in bf16
    atg_bf = at_g.astype(jnp.bfloat16)

    rows = n_steps * tm
    out_bytes = jnp.dtype(out_dtype).itemsize
    cost = pl.CostEstimate(
        flops=2 * rows * Kin * Dp + 2 * rows * Kin * G + 6 * rows * Dp * G,
        transcendentals=rows * G,
        bytes_accessed=(mp_raw * Kin * x.dtype.itemsize
                        + mp_raw * Dp * out_bytes
                        + 2 * (Kin * Dp + Kin * G + 3 * Dp * G) + 4 * Dp),
    )

    out_packed = pl.pallas_call(
        functools.partial(_spectral_kernel, eps=eps, inv_d=1.0 / D),
        out_shape=jax.ShapeDtypeStruct((mp_raw, Dp), out_dtype),
        grid_spec=pltpu.PrefetchScalarGridSpec(
            num_scalar_prefetch=0,
            grid=(n_steps,),
            in_specs=[
                pl.BlockSpec((tm, Kin), lambda i: (i, 0)),   # packed patch rows
                pl.BlockSpec((Kin, Dp), lambda i: (0, 0)),   # block-diag conv weight
                pl.BlockSpec((Kin, G), lambda i: (0, 0)),    # mean-fold weight sums
                pl.BlockSpec((Dp, G), lambda i: (0, 0)),     # group-sum matrix
                pl.BlockSpec((G, Dp), lambda i: (0, 0)),     # group-broadcast matrix
                pl.BlockSpec((G, Dp), lambda i: (0, 0)),     # group-broadcast * gamma
                pl.BlockSpec((1, Dp), lambda i: (0, 0)),     # LN beta (tiled)
            ],
            out_specs=pl.BlockSpec((tm, Dp), lambda i: (i, 0)),
        ),
        compiler_params=pltpu.CompilerParams(
            dimension_semantics=("parallel",)),
        cost_estimate=cost,
    )(x_packed, w_bf, ws_bf, a_bf, at_bf, atg_bf, b2d)

    # Unpack: (mp, G*D) -> (mp*G, D) -> drop tail pad -> (B, N, D).
    out = out_packed.reshape(mp_raw * G, D)
    if pad_rows:
        out = out[:M]
    return out.reshape(B, N, D)


if __name__ == "__main__":
    # Small shapes consistent with the module:
    #   dim = 32, patch_size = 8, input spectrum length L = 64 -> N = 8 tokens.
    B, L = 2, 64
    dim, patch_size = 32, 8

    key = jax.random.PRNGKey(0)
    k_x, k_w = jax.random.split(key)

    x = jax.random.normal(k_x, (B, 1, L), dtype=jnp.float32)
    # Deterministic "init": conv weight ~ N(0, 1/sqrt(P)), LN gamma=1, beta=0.
    conv_weight = jax.random.normal(k_w, (dim, 1, patch_size), dtype=jnp.float32)
    conv_weight = conv_weight / jnp.sqrt(float(patch_size))
    gamma = jnp.ones((dim,), dtype=jnp.float32)
    beta = jnp.zeros((dim,), dtype=jnp.float32)

    out = spectral_encoding(x, conv_weight, gamma, beta, patch_size=patch_size)
    out = jax.block_until_ready(out)

    # Pure-JAX f32 reference of the same math (Conv1d patch-embed + LayerNorm).
    N = L // patch_size
    w2d = jnp.transpose(conv_weight[:, 0, :], (1, 0))
    ref = jnp.einsum("bnp,pd->bnd", x.reshape(B, N, patch_size), w2d,
                     precision=jax.lax.Precision.HIGHEST)
    mu = ref.mean(-1, keepdims=True)
    var = ((ref - mu) ** 2).mean(-1, keepdims=True)
    ref = (ref - mu) * jax.lax.rsqrt(var + 1e-5) * gamma + beta

    assert out.shape == (B, N, dim)
    assert out.dtype == jnp.bfloat16
    # bf16 MXU inputs + bf16 output: expect ~1e-2 relative error on O(1) LN outputs.
    err = jnp.max(jnp.abs(out.astype(jnp.float32) - ref))
    assert err < 1e-1, err

    print("KERNEL_OK")
</pallas_src>

<mosaic_0001>
module attributes {stable_mosaic.version = 11 : i64} {
  func.func @_spectral_kernel(%arg0: i32, %arg1: memref<1x128xf32, #tpu.memory_space<vmem>>, %arg2: memref<128x512xbf16, #tpu.memory_space<vmem>>, %arg3: memref<128x16xbf16, #tpu.memory_space<vmem>>, %arg4: memref<512x16xbf16, #tpu.memory_space<vmem>>, %arg5: memref<16x512xbf16, #tpu.memory_space<vmem>>, %arg6: memref<16x512xbf16, #tpu.memory_space<vmem>>, %arg7: memref<1x512xf32, #tpu.memory_space<vmem>>, %arg8: memref<1x512xbf16, #tpu.memory_space<vmem>>) attributes {dimension_semantics = [#tpu.dimension_semantics<parallel>], iteration_bounds = array<i64: 1>, scalar_prefetch = 0 : i64, scratch_operands = 0 : i64, tpu.core_type = #tpu.core_type<tc>, window_params = [{transform_indices = @transform_0, window_bounds = array<i64: 1, 128>}, {pipeline_mode = #tpu.pipeline_mode<synchronous>, transform_indices = @transform_1, window_bounds = array<i64: 128, 512>}, {pipeline_mode = #tpu.pipeline_mode<synchronous>, transform_indices = @transform_2, window_bounds = array<i64: 128, 16>}, {pipeline_mode = #tpu.pipeline_mode<synchronous>, transform_indices = @transform_3, window_bounds = array<i64: 512, 16>}, {pipeline_mode = #tpu.pipeline_mode<synchronous>, transform_indices = @transform_4, window_bounds = array<i64: 16, 512>}, {pipeline_mode = #tpu.pipeline_mode<synchronous>, transform_indices = @transform_5, window_bounds = array<i64: 16, 512>}, {pipeline_mode = #tpu.pipeline_mode<synchronous>, transform_indices = @transform_6, window_bounds = array<i64: 1, 512>}, {transform_indices = @transform_7, window_bounds = array<i64: 1, 512>}]} {
    %c0 = arith.constant 0 : index
    %c0_0 = arith.constant 0 : index
    %0 = vector.load %arg1[%c0, %c0_0] : memref<1x128xf32, #tpu.memory_space<vmem>>, vector<1x128xf32>
    %1 = arith.truncf %0 : vector<1x128xf32> to vector<1x128xbf16>
    %c0_1 = arith.constant 0 : index
    %c0_2 = arith.constant 0 : index
    %2 = vector.load %arg2[%c0_1, %c0_2] : memref<128x512xbf16, #tpu.memory_space<vmem>>, vector<128x512xbf16>
    %cst = arith.constant dense<0.000000e+00> : vector<1x512xf32>
    %3 = tpu.matmul %1, %2, %cst {dimension_numbers = #tpu.dot_dimension_numbers<[1], [0], [0], [1], [0, 0, 1, 1], [], []>} : vector<1x128xbf16>, vector<128x512xbf16>, vector<1x512xf32> -> vector<1x512xf32>
    %c0_3 = arith.constant 0 : index
    %c0_4 = arith.constant 0 : index
    %4 = vector.load %arg3[%c0_3, %c0_4] : memref<128x16xbf16, #tpu.memory_space<vmem>>, vector<128x16xbf16>
    %cst_5 = arith.constant dense<0.000000e+00> : vector<1x16xf32>
    %5 = tpu.matmul %1, %4, %cst_5 {dimension_numbers = #tpu.dot_dimension_numbers<[1], [0], [0], [1], [0, 0, 1, 1], [], []>} : vector<1x128xbf16>, vector<128x16xbf16>, vector<1x16xf32> -> vector<1x16xf32>
    %6 = arith.truncf %5 : vector<1x16xf32> to vector<1x16xbf16>
    %c0_6 = arith.constant 0 : index
    %c0_7 = arith.constant 0 : index
    %7 = vector.load %arg5[%c0_6, %c0_7] : memref<16x512xbf16, #tpu.memory_space<vmem>>, vector<16x512xbf16>
    %cst_8 = arith.constant dense<0.000000e+00> : vector<1x512xf32>
    %8 = tpu.matmul %6, %7, %cst_8 {dimension_numbers = #tpu.dot_dimension_numbers<[1], [0], [0], [1], [0, 0, 1, 1], [], []>} : vector<1x16xbf16>, vector<16x512xbf16>, vector<1x512xf32> -> vector<1x512xf32>
    %9 = arith.subf %3, %8 : vector<1x512xf32>
    %10 = arith.mulf %9, %9 : vector<1x512xf32>
    %11 = arith.truncf %10 : vector<1x512xf32> to vector<1x512xbf16>
    %c0_9 = arith.constant 0 : index
    %c0_10 = arith.constant 0 : index
    %12 = vector.load %arg4[%c0_9, %c0_10] : memref<512x16xbf16, #tpu.memory_space<vmem>>, vector<512x16xbf16>
    %cst_11 = arith.constant dense<0.000000e+00> : vector<1x16xf32>
    %13 = tpu.matmul %11, %12, %cst_11 {dimension_numbers = #tpu.dot_dimension_numbers<[1], [0], [0], [1], [0, 0, 1, 1], [], []>} : vector<1x512xbf16>, vector<512x16xbf16>, vector<1x16xf32> -> vector<1x16xf32>
    %cst_12 = arith.constant 3.125000e-02 : f32
    %14 = vector.broadcast %cst_12 : f32 to vector<1x16xf32>
    %15 = arith.mulf %13, %14 : vector<1x16xf32>
    %cst_13 = arith.constant 9.99999974E-6 : f32
    %16 = vector.broadcast %cst_13 : f32 to vector<1x16xf32>
    %17 = arith.addf %15, %16 : vector<1x16xf32>
    %18 = math.rsqrt %17 : vector<1x16xf32>
    %19 = arith.truncf %18 : vector<1x16xf32> to vector<1x16xbf16>
    %c0_14 = arith.constant 0 : index
    %c0_15 = arith.constant 0 : index
    %20 = vector.load %arg6[%c0_14, %c0_15] : memref<16x512xbf16, #tpu.memory_space<vmem>>, vector<16x512xbf16>
    %cst_16 = arith.constant dense<0.000000e+00> : vector<1x512xf32>
    %21 = tpu.matmul %19, %20, %cst_16 {dimension_numbers = #tpu.dot_dimension_numbers<[1], [0], [0], [1], [0, 0, 1, 1], [], []>} : vector<1x16xbf16>, vector<16x512xbf16>, vector<1x512xf32> -> vector<1x512xf32>
    %22 = arith.mulf %9, %21 : vector<1x512xf32>
    %c0_17 = arith.constant 0 : index
    %c0_18 = arith.constant 0 : index
    %23 = vector.load %arg7[%c0_17, %c0_18] : memref<1x512xf32, #tpu.memory_space<vmem>>, vector<1x512xf32>
    %24 = arith.addf %22, %23 : vector<1x512xf32>
    %25 = arith.truncf %24 : vector<1x512xf32> to vector<1x512xbf16>
    %c0_19 = arith.constant 0 : index
    %c0_20 = arith.constant 0 : index
    %26 = vector.load %arg8[%c0_19, %c0_20] : memref<1x512xbf16, #tpu.memory_space<vmem>>, vector<1x512xbf16>
    tpu.vector_store %arg8[%c0_19, %c0_20], %25 {strides = array<i32>} : memref<1x512xbf16, #tpu.memory_space<vmem>>, vector<1x512xbf16>,
    return
  }
  func.func @transform_0(%arg0: i32) -> (i32, i32) {
    %c0_i32 = arith.constant 0 : i32
    %c0_i32_0 = arith.constant 0 : i32
    return %arg0, %c0_i32 : i32, i32
  }
  func.func @transform_1(%arg0: i32) -> (i32, i32) {
    %c0_i32 = arith.constant 0 : i32
    %c0_i32_0 = arith.constant 0 : i32
    %c0_i32_1 = arith.constant 0 : i32
    return %c0_i32, %c0_i32_0 : i32, i32
  }
  func.func @transform_2(%arg0: i32) -> (i32, i32) {
    %c0_i32 = arith.constant 0 : i32
    %c0_i32_0 = arith.constant 0 : i32
    %c0_i32_1 = arith.constant 0 : i32
    return %c0_i32, %c0_i32_0 : i32, i32
  }
  func.func @transform_3(%arg0: i32) -> (i32, i32) {
    %c0_i32 = arith.constant 0 : i32
    %c0_i32_0 = arith.constant 0 : i32
    %c0_i32_1 = arith.constant 0 : i32
    return %c0_i32, %c0_i32_0 : i32, i32
  }
  func.func @transform_4(%arg0: i32) -> (i32, i32) {
    %c0_i32 = arith.constant 0 : i32
    %c0_i32_0 = arith.constant 0 : i32
    %c0_i32_1 = arith.constant 0 : i32
    return %c0_i32, %c0_i32_0 : i32, i32
  }
  func.func @transform_5(%arg0: i32) -> (i32, i32) {
    %c0_i32 = arith.constant 0 : i32
    %c0_i32_0 = arith.constant 0 : i32
    %c0_i32_1 = arith.constant 0 : i32
    return %c0_i32, %c0_i32_0 : i32, i32
  }
  func.func @transform_6(%arg0: i32) -> (i32, i32) {
    %c0_i32 = arith.constant 0 : i32
    %c0_i32_0 = arith.constant 0 : i32
    %c0_i32_1 = arith.constant 0 : i32
    return %c0_i32, %c0_i32_0 : i32, i32
  }
  func.func @transform_7(%arg0: i32) -> (i32, i32) {
    %c0_i32 = arith.constant 0 : i32
    %c0_i32_0 = arith.constant 0 : i32
    return %arg0, %c0_i32 : i32, i32
  }
}

</mosaic_0001>

<bundles_post_ra>
// kernel: tpu_custom_call.1
= control target key start
LH: loop header
LB: loop body
LE: loop exit
PB: predicated region body
PF: predicated region fallthrough
CT: control target
= control target key end

     0   :  { %v1365_v2 = vmov 0   ;;  %v1366_v24 = vmov 0.0   ;;  %vm1367_vm0 = vmmov 0   ;;  %s1706_s0 = inlined_call_operand.vmem [shape: f32[1,128], index: 0, kind: input, shape index: {}]   ;;  %s1707_s1 = inlined_call_operand.vmem [shape: bf16[128,512], index: 1, kind: input, shape index: {}]   ;;  %s1708_s2 = inlined_call_operand.vmem [shape: bf16[128,16], index: 2, kind: input, shape index: {}]   ;;  %s1709_s3 = inlined_call_operand.vmem [shape: bf16[512,16], index: 3, kind: input, shape index: {}]   ;;  %s1710_s4 = inlined_call_operand.vmem [shape: bf16[16,512], index: 4, kind: input, shape index: {}]   ;;  %s1711_s5 = inlined_call_operand.vmem [shape: bf16[16,512], index: 5, kind: input, shape index: {}]   ;;  %s1712_s6 = inlined_call_operand.vmem [shape: f32[1,512], index: 6, kind: input, shape index: {}]   ;;  %s1713_s7 = inlined_call_operand.hbm [shape: bf16[1,512], index: 7, kind: output, shape index: {}]  }
   0x1   :  { %v1239_v0 = vld [vmem:[%s1707_s1 + $0x4] ss:$16 sps:$4 sm:$0xff]   ;;  %v1241_v1 = vld [vmem:[%s1707_s1] ss:$16 sps:$4 sm:$0xff]   ;;  %254 = vmatprep.mubr.bf16.mxu0 %v1365_v2  ;;  %295 = vmatprep.mubr.bf16.mxu1 %v1365_v2  ;;  %v1271_v14 = vld [vmem:[%s1707_s1 + $0xc] ss:$16 sps:$4 sm:$0xff]  }
   0x2   :  { %222 = vmatprep.subr.bf16.mxu0 %v1239_v0  ;;  %v1242_v3 = vld [vmem:[%s1707_s1 + $0x24] ss:$16 sps:$4 sm:$0xff]   ;;  %v1244_v4 = vld [vmem:[%s1707_s1 + $0x20] ss:$16 sps:$4 sm:$0xff]   ;;  %v1273_v15 = vld [vmem:[%s1707_s1 + $0x8] ss:$16 sps:$4 sm:$0xff]   ;;  %263 = vmatprep.subr.bf16.mxu1 %v1271_v14 }
   0x3   :  { %223 = vmatpush1.bf16.msra.mxu0 %v1241_v1  ;;  %v1245_v5 = vld [vmem:[%s1707_s1 + $0x44] ss:$16 sps:$4 sm:$0xff]   ;;  %v1247_v6 = vld [vmem:[%s1707_s1 + $0x40] ss:$16 sps:$4 sm:$0xff]   ;;  %v1274_v17 = vld [vmem:[%s1707_s1 + $0x2c] ss:$16 sps:$4 sm:$0xff]   ;;  %264 = vmatpush1.bf16.msra.mxu1 %v1273_v15 }
   0x4   :  { %224 = vmatprep.subr.bf16.mxu0 %v1242_v3  ;;  %v1248_v7 = vld [vmem:[%s1707_s1 + $0x64] ss:$16 sps:$4 sm:$0xff]   ;;  %v1250_v8 = vld [vmem:[%s1707_s1 + $0x60] ss:$16 sps:$4 sm:$0xff]   ;;  %v1276_v18 = vld [vmem:[%s1707_s1 + $0x28] ss:$16 sps:$4 sm:$0xff]   ;;  %265 = vmatprep.subr.bf16.mxu1 %v1274_v17 }
   0x5   :  { %v1251_v9 = vld [vmem:[%s1707_s1 + $0x84] ss:$16 sps:$4 sm:$0xff]   ;;  %v1253_v10 = vld [vmem:[%s1707_s1 + $0x80] ss:$16 sps:$4 sm:$0xff]   ;;  %v1264_v25 = vld [vmem:[%s1708_s2 + $0x8] sm:$0xff]  }
   0x6   :  { %v1254_v11 = vld [vmem:[%s1707_s1 + $0xa4] ss:$16 sps:$4 sm:$0xff]   ;;  %v1256_v12 = vld [vmem:[%s1707_s1 + $0xa0] ss:$16 sps:$4 sm:$0xff]   ;;  %v1266_v27 = vld [vmem:[%s1708_s2 + $0x18] sm:$0xff]  }
   0x7   :  { %225 = vmatpush1.bf16.msra.mxu0 %v1244_v4  ;;  %v1257_v13 = vld [vmem:[%s1707_s1 + $0xc4] ss:$16 sps:$4 sm:$0xff]   ;;  %v1259_v16 = vld [vmem:[%s1707_s1 + $0xc0] ss:$16 sps:$4 sm:$0xff]   ;;  %266 = vmatpush1.bf16.msra.mxu1 %v1276_v18 }
   0x8   :  { %226 = vmatprep.subr.bf16.mxu0 %v1245_v5  ;;  %v1260_v19 = vld [vmem:[%s1707_s1 + $0xe4] ss:$16 sps:$4 sm:$0xff]   ;;  %v1262_v20 = vld [vmem:[%s1707_s1 + $0xe0] ss:$16 sps:$4 sm:$0xff]  }
   0x9   :  { %v28_v21 = vld [vmem:[%s1706_s0] sm:$0x1]  ;;  %v1265_v26 = vld [vmem:[%s1708_s2 + $0x10] sm:$0xff]  }
   0xa   :  { %v1263_v22 = vld [vmem:[%s1708_s2] sm:$0xff]   ;;  %v29_v23 = vpack.c.bf16 %v28_v21, %v28_v21 }
   0xb   :  { %227 = vmatpush1.bf16.msra.mxu0 %v1247_v6  ;;  %v1267_v28 = vld [vmem:[%s1708_s2 + $0x20] sm:$0xff]  }
   0xc   :  { %228 = vmatprep.subr.bf16.mxu0 %v1248_v7 }
   0xf   :  { %229 = vmatpush1.bf16.msra.mxu0 %v1250_v8 }
  0x10   :  { %230 = vmatprep.subr.bf16.mxu0 %v1251_v9 }
  0x13   :  { %231 = vmatpush1.bf16.msra.mxu0 %v1253_v10 }
  0x14   :  { %232 = vmatprep.subr.bf16.mxu0 %v1254_v11 }
  0x17   :  { %233 = vmatpush1.bf16.msra.mxu0 %v1256_v12 }
  0x18   :  { %234 = vmatprep.subr.bf16.mxu0 %v1257_v13 }
  0x1b   :  { %235 = vmatpush1.bf16.msra.mxu0 %v1259_v16 }
  0x1c   :  { %236 = vmatprep.subr.bf16.mxu0 %v1260_v19 }
  0x1f   :  { %237 = vmatpush1.bf16.msra.mxu0 %v1262_v20 }
  0x20   :  { %1214 = vmatprep.subr.bf16.mxu0 %v1366_v24 }
  0x22   :  { %255 = vmatmul.mubr.bf16.vlgmr.msra.gmra.mrb[0].mxu0 %v29_v23 }
  0x23   :  { %1215 = vmatpush3.bf16.msra.mxu0 %v1263_v22  ;;  %1230 = vmatprep.mubr.msk.bf16.mxu0 %vm1367_vm0, %v1366_v24 }
  0x24   :  { %1216 = vmatprep.subr.bf16.mxu0 %v1366_v24 }
  0x27   :  { %1217 = vmatpush3.bf16.msra.mxu0 %v1264_v25 }
  0x28   :  { %1218 = vmatprep.subr.bf16.mxu0 %v1366_v24 }
  0x2b   :  { %1219 = vmatpush3.bf16.msra.mxu0 %v1265_v26 }
  0x2c   :  { %1220 = vmatprep.subr.bf16.mxu0 %v1366_v24 }
  0x2f   :  { %1221 = vmatpush3.bf16.msra.mxu0 %v1266_v27 }
  0x30   :  { %1222 = vmatprep.subr.bf16.mxu0 %v1366_v24 }
  0x31   :  { %12 = vsyncpa [#allocation3], 0  ;;  %v1268_v29 = vld [vmem:[%s1708_s2 + $0x28] sm:$0xff]   ;;  %v1269_v30 = vld [vmem:[%s1708_s2 + $0x30] sm:$0xff]   ;;  %vm433_vm1 = vcmask 130048   ;;  %vm1043_vm2 = vcmask 1040384  }
  0x32   :  { %v1270_v31 = vld [vmem:[%s1708_s2 + $0x38] sm:$0xff]   ;;  %v1297_v44 = vld [vmem:[%s1710_s4 + $0x4] ss:$16 sps:$4 sm:$0xff]   ;;  %v1295_v45 = vld [vmem:[%s1710_s4] ss:$16 sps:$4 sm:$0xff]   ;;  %vm1046_vm4 = vcmask 1041409  }
  0x33   :  { %1223 = vmatpush3.bf16.msra.mxu0 %v1267_v28  ;;  %v1277_v32 = vld [vmem:[%s1707_s1 + $0x4c] ss:$16 sps:$4 sm:$0xff]   ;;  %v1279_v33 = vld [vmem:[%s1707_s1 + $0x48] ss:$16 sps:$4 sm:$0xff]   ;;  %v1306_v47 = vld [vmem:[%s1709_s3 + $0xc0] sm:$0xff]   ;;  %vm1050_vm8 = vcmask 1042434  }
  0x34   :  { %1224 = vmatprep.subr.bf16.mxu0 %v1366_v24  ;;  %267 = vmatprep.subr.bf16.mxu1 %v1277_v32  ;;  %v1280_v34 = vld [vmem:[%s1707_s1 + $0x6c] ss:$16 sps:$4 sm:$0xff]   ;;  %v1282_v35 = vld [vmem:[%s1707_s1 + $0x68] ss:$16 sps:$4 sm:$0xff]   ;;  %v1308_v48 = vld [vmem:[%s1709_s3 + $0x80] sm:$0xff]   ;;  %vm1054_vm12 = vcmask 1043459  }
  0x35   :  { %268 = vmatpush1.bf16.msra.mxu1 %v1279_v33  ;;  %v1283_v36 = vld [vmem:[%s1707_s1 + $0x8c] ss:$16 sps:$4 sm:$0xff]   ;;  %v1285_v37 = vld [vmem:[%s1707_s1 + $0x88] ss:$16 sps:$4 sm:$0xff]   ;;  %v1314_v51 = vld [vmem:[%s1709_s3 + $0xd0] sm:$0xff]  }
  0x36   :  { %269 = vmatprep.subr.bf16.mxu1 %v1280_v34  ;;  %v1286_v38 = vld [vmem:[%s1707_s1 + $0xac] ss:$16 sps:$4 sm:$0xff]   ;;  %v1288_v39 = vld [vmem:[%s1707_s1 + $0xa8] ss:$16 sps:$4 sm:$0xff]   ;;  %v1316_v52 = vld [vmem:[%s1709_s3 + $0x90] sm:$0xff]  }
  0x37   :  { %1225 = vmatpush3.bf16.msra.mxu0 %v1268_v29  ;;  %v1289_v40 = vld [vmem:[%s1707_s1 + $0xcc] ss:$16 sps:$4 sm:$0xff]   ;;  %v1291_v41 = vld [vmem:[%s1707_s1 + $0xc8] ss:$16 sps:$4 sm:$0xff]   ;;  %v1301_v63 = vld [vmem:[%s1709_s3 + $0x40] sm:$0xff]  }
  0x38   :  { %1226 = vmatprep.subr.bf16.mxu0 %v1366_v24  ;;  %v1292_v42 = vld [vmem:[%s1707_s1 + $0xec] ss:$16 sps:$4 sm:$0xff]   ;;  %v1294_v43 = vld [vmem:[%s1707_s1 + $0xe8] ss:$16 sps:$4 sm:$0xff]   ;;  %v1302_v3 = vld [vmem:[%s1709_s3] sm:$0xff]  }
  0x39   :  { %270 = vmatpush1.bf16.msra.mxu1 %v1282_v35  ;;  %v1300_v46 = vld [vmem:[%s1710_s4 + $0xc] ss:$16 sps:$4 sm:$0xff]   ;;  %v1298_v60 = vld [vmem:[%s1710_s4 + $0x8] ss:$16 sps:$4 sm:$0xff]   ;;  %v1305_v6 = vld [vmem:[%s1709_s3 + $0x50] sm:$0xff]  }
  0x3a   :  { %271 = vmatprep.subr.bf16.mxu1 %v1283_v36  ;;  %v1310_v49 = vld [vmem:[%s1709_s3 + $0xc8] sm:$0xff]   ;;  %v1318_v53 = vld [vmem:[%s1709_s3 + $0xd8] sm:$0xff]   ;;  %v1307_v7 = vld [vmem:[%s1709_s3 + $0x10] sm:$0xff]   ;;  %vm1044_vm3 = vsmask.f32 256 }
  0x3b   :  { %1227 = vmatpush3.bf16.msra.mxu0 %v1269_v30  ;;  %v1312_v50 = vld [vmem:[%s1709_s3 + $0x88] sm:$0xff]   ;;  %v1320_v54 = vld [vmem:[%s1709_s3 + $0x98] sm:$0xff]   ;;  %v1313_v10 = vld [vmem:[%s1709_s3 + $0x60] sm:$0xff]   ;;  %vm1047_vm5 = vsmask.f32 1280 }
  0x3c   :  { %1228 = vmatprep.subr.bf16.mxu0 %v1366_v24  ;;  %v1303_v4 = vld [vmem:[%s1709_s3 + $0x48] sm:$0xff]   ;;  %v1309_v8 = vld [vmem:[%s1709_s3 + $0x58] sm:$0xff]   ;;  %v1315_v11 = vld [vmem:[%s1709_s3 + $0x20] sm:$0xff]   ;;  %vm1051_vm9 = vsmask.f32 2304 }
  0x3d   :  { %272 = vmatpush1.bf16.msra.mxu1 %v1285_v37  ;;  %v1304_v5 = vld [vmem:[%s1709_s3 + $0x8] sm:$0xff]   ;;  %v1311_v9 = vld [vmem:[%s1709_s3 + $0x18] sm:$0xff]   ;;  %v1321_v18 = vld [vmem:[%s1709_s3 + $0x70] sm:$0xff]   ;;  %vm1055_vm13 = vsmask.f32 3328 }
  0x3e   :  { %273 = vmatprep.subr.bf16.mxu1 %v1286_v38  ;;  %v1317_v12 = vld [vmem:[%s1709_s3 + $0x68] sm:$0xff]   ;;  %v1322_v19 = vld [vmem:[%s1709_s3 + $0xe0] sm:$0xff]   ;;  %v1323_v20 = vld [vmem:[%s1709_s3 + $0x30] sm:$0xff]  }
  0x3f   :  { %1229 = vmatpush3.bf16.msra.mxu0 %v1270_v31  ;;  %v1319_v13 = vld [vmem:[%s1709_s3 + $0x28] sm:$0xff]   ;;  %v1324_v21 = vld [vmem:[%s1709_s3 + $0xa0] sm:$0xff]   ;;  %v1325_v22 = vld [vmem:[%s1709_s3 + $0x78] sm:$0xff]  }
  0x40   :  { %1192 = vmatprep.subr.bf16.mxu0 %v1306_v47  ;;  %v1327_v24 = vld [vmem:[%s1709_s3 + $0x38] sm:$0xff]   ;;  %v1328_v25 = vld [vmem:[%s1709_s3 + $0xa8] sm:$0xff]   ;;  %v1329_v26 = vld [vmem:[%s1709_s3 + $0xf0] sm:$0xff]  }
  0x41   :  { %274 = vmatpush1.bf16.msra.mxu1 %v1288_v39  ;;  %v1330_v27 = vld [vmem:[%s1709_s3 + $0xb0] sm:$0xff]   ;;  %v1331_v28 = vld [vmem:[%s1709_s3 + $0xf8] sm:$0xff]   ;;  %vm1680_vm6 = vmand %vm1043_vm2, %vm1044_vm3 }
  0x42   :  { %1231 = vmatmul.mubr.bf16.vlgmr.msra.gmra.mrb[4].mxu0 %v29_v23  ;;  %275 = vmatprep.subr.bf16.mxu1 %v1289_v40  ;;  %v1332_v29 = vld [vmem:[%s1709_s3 + $0xb8] sm:$0xff]   ;;  %vm1684_vm7 = vmand %vm1046_vm4, %vm1047_vm5 }
  0x43   :  { %1193 = vmatpush3.bf16.msra.mxu0 %v1308_v48  ;;  %vm1049_vm10 = vmor %vm1684_vm7, %vm1680_vm6 }
  0x44   :  { %1194 = vmatprep.subr.bf16.mxu0 %v1310_v49  ;;  %vm1052_vm11 = vmand %vm1050_vm8, %vm1051_vm9 }
  0x45   :  { %276 = vmatpush1.bf16.msra.mxu1 %v1291_v41  ;;  %vm1053_vm14 = vmor %vm1052_vm11, %vm1049_vm10 }
  0x46   :  { %277 = vmatprep.subr.bf16.mxu1 %v1292_v42  ;;  %vm1056_vm15 = vmand %vm1054_vm12, %vm1055_vm13 }
  0x47   :  { %1195 = vmatpush3.bf16.msra.mxu0 %v1312_v50  ;;  %v1335_v50 = vld [vmem:[%s1711_s5 + $0x4] ss:$16 sps:$4 sm:$0xff]   ;;  %vm1057_vm0 = vmor %vm1056_vm15, %vm1053_vm14 }
  0x48   :  { %1196 = vmatprep.subr.bf16.mxu0 %v1314_v51  ;;  %v1333_v51 = vld [vmem:[%s1711_s5] ss:$16 sps:$4 sm:$0xff]  }
  0x49   :  { %278 = vmatpush1.bf16.msra.mxu1 %v1294_v43 }
  0x4a   :  { %437 = vmatprep.subr.bf16.mxu1 %v1297_v44 }
  0x4b   :  { %1197 = vmatpush3.bf16.msra.mxu0 %v1316_v52  ;;  %v1338_v52 = vld [vmem:[%s1711_s5 + $0xc] ss:$16 sps:$4 sm:$0xff]  }
  0x4c   :  { %296 = vmatmul.mubr.bf16.vlgmr.msra.gmra.mrb[0].mxu1 %v29_v23  ;;  %1198 = vmatprep.subr.bf16.mxu0 %v1318_v53  ;;  %v1326_v23 = vld [vmem:[%s1709_s3 + $0xe8] sm:$0xff]  }
  0x4d   :  { %438 = vmatpush1.bf16.msra.mxu1 %v1295_v45  ;;  %469 = vmatprep.mubr.bf16.mxu1 %v1365_v2 }
  0x4e   :  { %478 = vmatprep.subr.bf16.mxu1 %v1300_v46 }
  0x4f   :  { %1199 = vmatpush3.bf16.msra.mxu0 %v1320_v54 }
  0x50   :  { %1200 = vmatprep.subr.bf16.mxu0 %v1322_v19  ;;  %v1368_v19 = vmov 1966171168  }
  0x53   :  { %1201 = vmatpush3.bf16.msra.mxu0 %v1324_v21 }
  0x54   :  { %1202 = vmatprep.subr.bf16.mxu0 %v1326_v23 }
  0x57   :  { %1203 = vmatpush3.bf16.msra.mxu0 %v1328_v25 }
  0x58   :  { %1204 = vmatprep.subr.bf16.mxu0 %v1329_v26 }
  0x5b   :  { %1205 = vmatpush3.bf16.msra.mxu0 %v1330_v27 }
  0x5c   :  { %1206 = vmatprep.subr.bf16.mxu0 %v1331_v28 }
  0x5f   :  { %1207 = vmatpush3.bf16.msra.mxu0 %v1332_v29 }
  0xf5   :  { %v1569_v55 = vpop.f32.mrb[0].mxu0 }
  0xf6   :  { %v1571_v56 = vpop.f32.mrb[1].mxu0 }
  0xf7   :  { %v260_v57 = vpop.f32.mrb[2].mxu0 }
  0xf8   :  { %v261_v58 = vpop.f32.mrb[3].mxu0 }
 0x115   :  { %v402_v59 = vpop.f32.mrb[4].mxu0 }
 0x116   :  { %v408_v61 = vpack.c.bf16 %v402_v59, %v402_v59  ;;  %v1232_v62 = vpop.f32.mrb[5].mxu0 }
 0x117   :  { %v405_v0 = vpop.f32.mrb[6].mxu0 }
 0x118   :  { %v1233_v1 = vpop.f32.mrb[7].mxu0  ;;  %1119 = vmatmul.mubr.msk.bf16.vlgmr.msra.gmra.mrb[4].mxu1 %vm433_vm1, %v408_v61 }
 0x119   :  { %479 = vmatpush1.bf16.msra.mxu1 %v1298_v60  ;;  %510 = vmatprep.mubr.bf16.mxu1 %v1365_v2 }
 0x11a   :  { %1170 = vmatprep.subr.bf16.mxu1 %v1301_v63 }
 0x11f   :  { %v297_v14 = vpop.f32.mrb[0].mxu1 }
 0x120   :  { %1120 = vmatmul.mubr.msk.bf16.vlgmr.msra.gmra.mrb[8].mxu1 %vm433_vm1, %v408_v61  ;;  %v299_v15 = vpop.f32.mrb[1].mxu1 }
 0x121   :  { %1171 = vmatpush3.bf16.msra.mxu1 %v1302_v3  ;;  %v301_v16 = vpop.f32.mrb[2].mxu1 }
 0x122   :  { %1172 = vmatprep.subr.bf16.mxu1 %v1303_v4  ;;  %v302_v17 = vpop.f32.mrb[3].mxu1  ;;  %v1336_v4 = vld [vmem:[%s1711_s5 + $0x8] ss:$16 sps:$4 sm:$0xff]   ;;  %s1369_s5 = smov [#allocation2]  }
 0x125   :  { %1173 = vmatpush3.bf16.msra.mxu1 %v1304_v5 }
 0x126   :  { %1174 = vmatprep.subr.bf16.mxu1 %v1305_v6  ;;  %v986_v6 = vlaneseq }
 0x129   :  { %1175 = vmatpush3.bf16.msra.mxu1 %v1307_v7  ;;  %v987_v7 = vshrl.u32 %v986_v6, 7 }
 0x12a   :  { %1176 = vmatprep.subr.bf16.mxu1 %v1309_v8 }
 0x12b   :  { %v988_v8 = vsub.s32 0, %v987_v7  ;;  %v996_v21 = vsub.s32 2, %v987_v7  ;;  %v1000_v23 = vsub.s32 3, %v987_v7 }
 0x12d   :  { %1177 = vmatpush3.bf16.msra.mxu1 %v1311_v9  ;;  %v984_v9 = vld [vmem:[%s1712_s6] sm:$0xf]  ;;  %s1067_s6 = sshll.u32 %s1369_s5, 4  ;;  %s1068_s6 = int_to_ptr.vmem [resolvable:$true] %s1067_s6 }
 0x12e   :  { %1178 = vmatprep.subr.bf16.mxu1 %v1313_v10  ;;  %v992_v10 = vsub.s32 1, %v987_v7  ;;  %v997_v25 = vrot.slane %v984_v9, %v996_v21  ;;  %v1001_v29 = vrot.slane %v984_v9, %v1000_v23  ;;  %s1341_s12 = scalar_lea.vmem %s1068_s6, 64  ;;  %p1346_p1 = scmp.lt.s32.totalorder %s1068_s6, %s1068_s6 }
 0x12f   :  { %p1342_p0 = scmp.ne.s32.totalorder %s1068_s6, %s1341_s12  ;;  %p1347_p2 = scmp.lt.s32.totalorder %s1341_s12, %s1341_s12 }
 0x131   :  { %1179 = vmatpush3.bf16.msra.mxu1 %v1315_v11  ;;  %v989_v11 = vrot.slane %v984_v9, %v988_v8  ;;  %p1348_p3 = por %p1347_p2, %p1346_p1 }
 0x132   :  { %1180 = vmatprep.subr.bf16.mxu1 %v1317_v12 }
 0x133   :  { %p1349_p4 = pnand %p1348_p3, %p1342_p0 }
 0x135   :  { %1181 = vmatpush3.bf16.msra.mxu1 %v1319_v13  ;;  %v993_v13 = vrot.slane %v984_v9, %v992_v10 }
 0x136   :  { %1182 = vmatprep.subr.bf16.mxu1 %v1321_v18 }
 0x139   :  { %1183 = vmatpush3.bf16.msra.mxu1 %v1323_v20 }
 0x13a   :  { %1184 = vmatprep.subr.bf16.mxu1 %v1325_v22 }
 0x13d   :  { %1185 = vmatpush3.bf16.msra.mxu1 %v1327_v24 }
 0x13e   :  { %898 = vmatprep.subr.bf16.mxu1 %v1335_v50 }
 0x1eb   :  { %v471_v30 = vpop.f32.mrb[4].mxu1 }
 0x1ec   :  { %v519_v31 = vsub.f32 %v1569_v55, %v471_v30  ;;  %v473_v32 = vpop.f32.mrb[5].mxu1 }
 0x1ed   :  { %v520_v33 = vsub.f32 %v1571_v56, %v473_v32  ;;  %v475_v34 = vpop.f32.mrb[6].mxu1 }
 0x1ee   :  { %v523_v35 = vmul.f32 %v519_v31, %v519_v31  ;;  %v476_v36 = vpop.f32.mrb[7].mxu1 }
 0x1ef   :  { %v524_v37 = vmul.f32 %v520_v33, %v520_v33 }
 0x1f0   :  { %v527_v39 = vpack.c.bf16 %v523_v35, %v523_v35 }
 0x1f1   :  { %v528_v38 = vpack.c.bf16 %v524_v37, %v524_v37 }
 0x1f3   :  { %v512_v40 = vpop.f32.mrb[8].mxu1  ;;  %819 = vmatprep.mubr.bf16.mxu1 %v528_v38 }
 0x1f4   :  { %v1653_v41 = vsub.f32 %v297_v14, %v512_v40  ;;  %v514_v42 = vpop.f32.mrb[9].mxu1  ;;  %820 = vmatmul.mubr.bf16.vlgmr.msra.gmra.mrb[12].mxu1 %v527_v39 }
 0x1f5   :  { %v1655_v43 = vsub.f32 %v299_v15, %v514_v42  ;;  %v516_v44 = vpop.f32.mrb[10].mxu1  ;;  %930 = vmatprep.mubr.bf16.mxu1 %v1365_v2  ;;  %899 = vmatpush1.bf16.msra.mxu1 %v1333_v51 }
 0x1f6   :  { %v525_v45 = vmul.f32 %v1653_v41, %v1653_v41  ;;  %v517_v46 = vpop.f32.mrb[11].mxu1  ;;  %939 = vmatprep.subr.bf16.mxu1 %v1338_v52 }
 0x1f7   :  { %v526_v47 = vmul.f32 %v1655_v43, %v1655_v43 }
 0x1f8   :  { %v529_v49 = vpack.c.bf16 %v525_v45, %v525_v45 }
 0x1f9   :  { %v530_v48 = vpack.c.bf16 %v526_v47, %v526_v47 }
 0x1fb   :  { %859 = vmatprep.mubr.bf16.mxu0 %v530_v48 }
 0x1fc   :  { %860 = vmatmul.mubr.bf16.vlgmr.msra.gmra.mrb[8].mxu0 %v529_v49 }
 0x2c7   :  { %v1186_v53 = vpop.f32.mrb[12].mxu1 }
 0x2c8   :  { %v1187_v54 = vpop.f32.mrb[13].mxu1 }
 0x2c9   :  { %v1188_v55 = vadd.f32 %v1187_v54, %v1186_v53  ;;  %v1189_v56 = vpop.f32.mrb[14].mxu1 }
 0x2ca   :  { %v1190_v57 = vpop.f32.mrb[15].mxu1 }
 0x2cf   :  { %v1208_v58 = vpop.f32.mrb[8].mxu0 }
 0x2d0   :  { %v1209_v59 = vpop.f32.mrb[9].mxu0 }
 0x2d1   :  { %v1210_v60 = vadd.f32 %v1209_v59, %v1208_v58  ;;  %v1211_v61 = vpop.f32.mrb[10].mxu0 }
 0x2d2   :  { %v1212_v62 = vpop.f32.mrb[11].mxu0 }
 0x2d3   :  { %v862_v63 = vadd.f32 %v1210_v60, %v1188_v55 }
 0x2d5   :  { %v867_v0 = vmul.f32 0.03125, %v862_v63 }
 0x2d7   :  { %v868_v1 = vadd.f32 1e-05, %v867_v0 }
 0x2d9   :  { %1339 = vrsqrt.f32 %v868_v1 }
 0x2e3   :  { %v1340_v3 = vpop.eup %1339 }
 0x2e4   :  { %v870_v5 = vpack.c.bf16 %v1340_v3, %v1340_v3 }
 0x2e6   :  { %1157 = vmatmul.mubr.msk.bf16.vlgmr.msra.gmra.mrb[16].mxu1 %vm433_vm1, %v870_v5 }
 0x2e7   :  { %940 = vmatpush1.bf16.msra.mxu1 %v1336_v4  ;;  %971 = vmatprep.mubr.bf16.mxu1 %v1365_v2  ;;  %v1021_v2 = vunpack.c.l.s4 %v1368_v19 }
 0x2e9   :  { %v1022_v27 = vunpack.c.0.s8 %v1021_v2 }
 0x2eb   :  { %v1025_v37 = vsub.s32 %v1022_v27, %v987_v7 }
 0x2ee   :  { %1158 = vmatmul.mubr.msk.bf16.vlgmr.msra.gmra.mrb[20].mxu1 %vm433_vm1, %v870_v5 }
 0x3b9   :  { %v932_v12 = vpop.f32.mrb[16].mxu1 }
 0x3ba   :  { %v980_v14 = vmul.f32 %v932_v12, %v519_v31  ;;  %v934_v15 = vpop.f32.mrb[17].mxu1 }
 0x3bb   :  { %v981_v16 = vmul.f32 %v934_v15, %v520_v33  ;;  %v936_v17 = vpop.f32.mrb[18].mxu1 }
 0x3bc   :  { %v1006_v18 = vadd.f32 %v989_v11, %v980_v14  ;;  %v937_v20 = vpop.f32.mrb[19].mxu1 }
 0x3bd   :  { %v1007_v22 = vadd.f32 %v993_v13, %v981_v16 }
 0x3bf   :  { %v1159_v24 = vpack.c.bf16 %v1007_v22, %v1006_v18 }
 0x3c1   :  { %v973_v28 = vpop.f32.mrb[20].mxu1  ;;  %v1026_v40 = vrot.slane %v1159_v24, %v1025_v37 }
 0x3c2   :  { %v982_v31 = vmul.f32 %v973_v28, %v1653_v41  ;;  %v975_v32 = vpop.f32.mrb[21].mxu1 }
 0x3c3   :  { %v983_v33 = vmul.f32 %v975_v32, %v1655_v43  ;;  %v977_v34 = vpop.f32.mrb[22].mxu1  ;;  %v1058_v43 = vld [vmem:[#allocation2] sm:$0xf] }
 0x3c4   :  { %v1008_v35 = vadd.f32 %v997_v25, %v982_v31  ;;  %v978_v36 = vpop.f32.mrb[23].mxu1 }
 0x3c5   :  { %v1009_v38 = vadd.f32 %v1001_v29, %v983_v33 }
 0x3c7   :  { %v1160_v39 = vpack.c.bf16 %v1009_v38, %v1008_v35 }
 0x3c9   :  { %v1033_v41 = vrot.slane %v1160_v39, %v1025_v37 }
 0x3cb   :  { %v1034_v42 = vcombine.low %v1026_v40, %v1033_v41 }
 0x3cd   :  { %v1041_v44 = vrot.slane %v1034_v42, %v1025_v37 }
 0x3cf   :  { %v1059_v45 = vsel %vm1057_vm0, %v1041_v44, %v1058_v43 }
 0x3d0   :  { %1060 = vst [vmem:[#allocation2] sm:$0xf] %v1059_v45 }
 0x3d1   :  { %1352 = shalt.err (!%p1349_p4)
}
 0x3d2   :  { %s1353_s14 = scalar_lea.hbm %s1713_s7, 64 }
 0x3d3   :  { %p1354_p5 = scmp.ne.s32.totalorder %s1713_s7, %s1353_s14  ;;  %p1357_p6 = scmp.lt.u32.totalorder %s1353_s14, %s1713_s7 }
 0x3d5   :  { %p1359_p7 = pnand %p1357_p6, %p1354_p5 }
 0x3d7   :  { %1362 = shalt.err (!%p1359_p7)
}
 0x3d8   :  { %1070 = dma.vmem_to_hbm [thread:$0]  %s1068_s6, 64, %s1713_s7, [#allocation3]  }
 0x3d9   :  { %1363 = dma.done.wait [#allocation3], 64  }
 0x3da   :  { %1364 = vsyncadd [#allocation3], 4294967232 }
 0x3db   :  { %1074 = vsyncpa [#allocation3], 1 }

</bundles_post_ra>
